<compile_context>
chip_gen: v5e
topology: v5e:2x2
jax: 0.10.0
libtpu: 0.0.40
codegen_flags: <defaults>
</compile_context>

<pallas_src>
import jax
import jax.numpy as jnp
from jax.experimental import pallas as pl
from jax.experimental.pallas import tpu as pltpu

BN_EPS = 1e-5
LANE = 128


def _round_up(v, m):
    return (v + m - 1) // m * m


def _pick_w_tile(lout_pad, cap=512):
    """Largest multiple of 128 that divides the per-batch lane stride and is <= cap."""
    best = LANE
    t = LANE
    while t <= min(lout_pad, cap):
        if lout_pad % t == 0:
            best = t
        t += LANE
    return best


def _make_kernel(inv_count):
    """Fused conv -> BN(train) -> ReLU -> 1x1 kernel.  grid = (phase, w_tile)."""

    def kernel(xs_ref, wf_ref, gamma_ref, beta_ref, w1_ref, b1_ref,
               out_ref, s1_ref, s2_ref):
        phase = pl.program_id(0)
        w_idx = pl.program_id(1)

        # Folded dynamic+static grouped conv: ONE MXU contraction over K*Cin
        # (bf16 x bf16 -> f32 accumulation).  Padded rows / padded lanes are exact zeros.
        y = jnp.dot(wf_ref[...], xs_ref[...],
                    preferred_element_type=jnp.float32)            # (C2p, W_TILE) f32

        @pl.when((phase == 0) & (w_idx == 0))
        def _():
            s1_ref[...] = jnp.zeros_like(s1_ref)
            s2_ref[...] = jnp.zeros_like(s2_ref)

        @pl.when(phase == 0)
        def _():
            # Chunked (per-tile) f32 accumulation of the BatchNorm sums.  Conv biases were
            # dropped (BN cancels them), so zero-padded lanes contribute exactly 0 here.
            s1_ref[...] += jnp.sum(y, axis=1, keepdims=True)
            s2_ref[...] += jnp.sum(y * y, axis=1, keepdims=True)

        @pl.when(phase == 1)
        def _():
            mean = s1_ref[...] * inv_count
            var = jnp.maximum(s2_ref[...] * inv_count - mean * mean, 0.0)
            scale = gamma_ref[...] * jax.lax.rsqrt(var + BN_EPS)   # EUP rsqrt
            shift = beta_ref[...] - mean * scale
            yr = jnp.maximum(y * scale + shift, 0.0)               # BN + ReLU (f32 FMA pass)
            out_ref[...] = (jnp.dot(w1_ref[...], yr,
                                    preferred_element_type=jnp.float32)
                            + b1_ref[...])

    return kernel


def mixed_conv1d(x, wp, wa, gamma, beta, w1, b1, *, groups=1,
                 conv_dtype=jnp.bfloat16):
    """x: (N, Cin, L); wp/wa: (Cout, Cin//groups, K); gamma/beta: (2*Cout,);
    w1: (Cout, 2*Cout); b1: (Cout,).  Returns (N, Cout, L-K+1) float32.

    Conv biases are intentionally not taken: training-mode BatchNorm subtracts the batch
    mean, which exactly cancels any per-channel constant added before it.
    """
    N, Cin, L = x.shape
    Cout, Cin_g, K = wa.shape
    G = groups
    Cout_g = Cout // G
    C2 = 2 * Cout
    Lout = L - K + 1

    # ---- padded sizes: channels to sublane multiples, lanes to multiples of 128 ----
    itemsize = jnp.dtype(conv_dtype).itemsize
    sub = 16 if itemsize == 2 else 8
    Cin_p = _round_up(Cin, 8)                 # per-tap row stride inside the stacked slab
    CKp = _round_up(K * Cin_p, sub)           # folded conv contraction dim
    C2p = _round_up(C2, sub)                  # conv-output / BN channels
    Cout_p = _round_up(Cout, 8)               # final output channels (f32)
    Lout_pad = _round_up(Lout, LANE)          # per-batch lane stride (unmasked stores)
    W_total = N * Lout_pad
    W_TILE = _pick_w_tile(Lout_pad)
    n_w = W_total // W_TILE

    # ---- folded, block-diagonal (grouped) conv weight: (C2p, CKp) ----
    # Channel order matches torch.cat([proj_x, for_x], 1): rows [0,Cout) dynamic, [Cout,2Cout) static.
    dense = jnp.zeros((C2, Cin, K), jnp.float32)
    for g in range(G):
        ic = slice(g * Cin_g, (g + 1) * Cin_g)
        dense = dense.at[g * Cout_g:(g + 1) * Cout_g, ic, :].set(
            wp[g * Cout_g:(g + 1) * Cout_g])
        dense = dense.at[Cout + g * Cout_g:Cout + (g + 1) * Cout_g, ic, :].set(
            wa[g * Cout_g:(g + 1) * Cout_g])
    wf = jnp.pad(dense, ((0, C2p - C2), (0, Cin_p - Cin), (0, 0)))   # (C2p, Cin_p, K)
    wf = jnp.transpose(wf, (0, 2, 1)).reshape(C2p, K * Cin_p)        # col = k*Cin_p + cin
    wf = jnp.pad(wf, ((0, 0), (0, CKp - K * Cin_p))).astype(conv_dtype)

    # ---- K-tap sublane-stacked activation slab (wrapper-side im2col), conv_dtype ----
    # xs[k*Cin_p + c, n*Lout_pad + j] = x[n, c, j + k]; pad columns are exact zeros.
    taps = []
    for k in range(K):
        tap = jnp.transpose(x[:, :, k:k + Lout], (1, 0, 2))          # (Cin, N, Lout)
        tap = jnp.pad(tap, ((0, Cin_p - Cin), (0, 0), (0, Lout_pad - Lout)))
        taps.append(tap.reshape(Cin_p, W_total))
    xs = jnp.concatenate(taps, axis=0)
    xs = jnp.pad(xs, ((0, CKp - K * Cin_p), (0, 0))).astype(conv_dtype)

    # ---- small per-channel params (kept f32) ----
    gamma_p = jnp.pad(gamma, (0, C2p - C2)).reshape(C2p, 1).astype(jnp.float32)
    beta_p = jnp.pad(beta, (0, C2p - C2)).reshape(C2p, 1).astype(jnp.float32)
    w1_p = jnp.pad(w1, ((0, Cout_p - Cout), (0, C2p - C2))).astype(jnp.float32)
    b1_p = jnp.pad(b1, (0, Cout_p - Cout)).reshape(Cout_p, 1).astype(jnp.float32)

    # ---- VMEM budget: double-buffered streamed tiles + resident weights (v7x-safe cap) ----
    stream = 2 * W_TILE * (CKp * itemsize + Cout_p * 4)
    resident = C2p * CKp * itemsize + 4 * (2 * C2p + Cout_p * C2p + Cout_p + 2 * C2p)
    vmem_limit = int(min(48 * 2 ** 20, max(16 * 2 ** 20, 8 * (stream + resident))))

    grid_spec = pltpu.PrefetchScalarGridSpec(
        num_scalar_prefetch=0,
        grid=(2, n_w),                               # (BN phase, W tile)
        in_specs=[
            pl.BlockSpec((CKp, W_TILE), lambda p, w: (0, w)),
            pl.BlockSpec((C2p, CKp), lambda p, w: (0, 0)),
            pl.BlockSpec((C2p, 1), lambda p, w: (0, 0)),
            pl.BlockSpec((C2p, 1), lambda p, w: (0, 0)),
            pl.BlockSpec((Cout_p, C2p), lambda p, w: (0, 0)),
            pl.BlockSpec((Cout_p, 1), lambda p, w: (0, 0)),
        ],
        # Phase 0 never writes the output: its block index stays pinned at 0, so no garbage
        # is ever written back; phase 1 walks the W tiles (overwriting block 0 first).
        out_specs=pl.BlockSpec((Cout_p, W_TILE), lambda p, w: (0, p * w)),
        scratch_shapes=[pltpu.VMEM((C2p, 1), jnp.float32),   # s1 (chunked BN sum)
                        pltpu.VMEM((C2p, 1), jnp.float32)],  # s2 (chunked BN sum of squares)
    )

    out_flat = pl.pallas_call(
        _make_kernel(1.0 / float(N * Lout)),
        out_shape=jax.ShapeDtypeStruct((Cout_p, W_total), jnp.float32),
        grid_spec=grid_spec,
        compiler_params=pltpu.CompilerParams(
            # Both axes carry state (phase ordering + BN partial sums) -> 'arbitrary'.
            dimension_semantics=("arbitrary", "arbitrary"),
            vmem_limit_bytes=vmem_limit,
        ),
    )(xs, wf, gamma_p, beta_p, w1_p, b1_p)

    # Epilogue: single reshape + transpose + slice (lane-dense per-batch stride).
    out = out_flat.reshape(Cout_p, N, Lout_pad)
    return jnp.transpose(out, (1, 0, 2))[:, :Cout, :Lout]


def reference_forward(x, wp, bp, wa, ba, gamma, beta, w1, b1, groups):
    """Pure-JAX reference mirroring the PyTorch forward semantics (f32)."""
    dn = jax.lax.conv_dimension_numbers(x.shape, wp.shape, ('NCH', 'OIH', 'NCH'))

    def conv(xx, w, b):
        y = jax.lax.conv_general_dilated(xx, w, (1,), 'VALID',
                                         dimension_numbers=dn,
                                         feature_group_count=groups,
                                         precision=jax.lax.Precision.HIGHEST)
        return y + b[None, :, None]

    y = jnp.concatenate([conv(x, wp, bp), conv(x, wa, ba)], axis=1)
    mean = jnp.mean(y, axis=(0, 2), keepdims=True)
    var = jnp.mean((y - mean) ** 2, axis=(0, 2), keepdims=True)
    y = (y - mean) / jnp.sqrt(var + BN_EPS)
    y = y * gamma[None, :, None] + beta[None, :, None]
    y = jnp.maximum(y, 0.0)
    return (jnp.einsum('oc,ncl->nol', w1, y,
                       precision=jax.lax.Precision.HIGHEST)
            + b1[None, :, None])


if __name__ == "__main__":
    # Module hyperparameters (small, consistent with the forward pass)
    base_proj_channels = 32          # query_size of KernelProjection1d
    in_channels = 4
    out_channels = 4                 # conv1 takes in_channels*2 inputs
    kernel_size = 3
    groups = 1
    N, L = 2, 16
    Lout = L - kernel_size + 1

    key = jax.random.PRNGKey(0)
    keys = jax.random.split(key, 10)

    # Inputs
    x = jax.random.normal(keys[0], (N, in_channels, L), jnp.float32)
    base_feat = jax.random.normal(keys[1], (base_proj_channels,), jnp.float32)

    # KernelProjection1d params: kernel = Linear(query, in*out*k // groups), bias = Linear(query, out)
    kflat = out_channels * (in_channels // groups) * kernel_size
    Wk = 0.1 * jax.random.normal(keys[2], (kflat, base_proj_channels), jnp.float32)
    bk = 0.1 * jax.random.normal(keys[3], (kflat,), jnp.float32)
    Wb = 0.1 * jax.random.normal(keys[4], (out_channels, base_proj_channels), jnp.float32)
    bb = 0.1 * jax.random.normal(keys[5], (out_channels,), jnp.float32)

    # conv1a (static nn.Conv1d) params
    wa = 0.1 * jax.random.normal(keys[6], (out_channels, in_channels // groups, kernel_size), jnp.float32)
    ba = 0.1 * jax.random.normal(keys[7], (out_channels,), jnp.float32)

    # BatchNorm1d(out_channels*2) params at PyTorch init
    gamma = jnp.ones((2 * out_channels,), jnp.float32)
    beta = jnp.zeros((2 * out_channels,), jnp.float32)

    # conv1 (1x1) params: in_channels*2 -> out_channels
    w1 = 0.1 * jax.random.normal(keys[8], (out_channels, in_channels * 2), jnp.float32)
    b1 = 0.1 * jax.random.normal(keys[9], (out_channels,), jnp.float32)

    # KernelProjection1d glue: project base_feat into the dynamic conv kernel/bias (tiny matvec).
    wp = (Wk @ base_feat + bk).reshape(out_channels, in_channels // groups, kernel_size)
    bp = Wb @ base_feat + bb

    # Production path: bf16 conv operands, f32 accumulation / BN / ReLU / 1x1.
    out = jax.block_until_ready(
        mixed_conv1d(x, wp, wa, gamma, beta, w1, b1, groups=groups))
    assert out.shape == (N, out_channels, Lout), out.shape

    # Tight check of the kernel math: exact module semantics evaluated on bf16-rounded conv
    # operands (the only quantization the bf16 path introduces; products are exact in f32).
    q = lambda a: a.astype(jnp.bfloat16).astype(jnp.float32)
    ref_q = reference_forward(q(x), q(wp), bp, q(wa), ba, gamma, beta, w1, b1, groups)
    err_q = float(jnp.max(jnp.abs(out - ref_q)))
    assert err_q < 1e-4, f"bf16-operand kernel vs quantized-input reference: {err_q}"

    # Exact-semantics check: f32 conv operands against the full f32 reference.
    out32 = jax.block_until_ready(
        mixed_conv1d(x, wp, wa, gamma, beta, w1, b1, groups=groups,
                     conv_dtype=jnp.float32))
    ref = reference_forward(x, wp, bp, wa, ba, gamma, beta, w1, b1, groups)
    err = float(jnp.max(jnp.abs(out32 - ref)))
    assert err < 1e-4, f"f32-operand kernel vs reference: {err}"

    print("KERNEL_OK")
</pallas_src>

<mosaic_0001>
module attributes {stable_mosaic.version = 11 : i64} {
  func.func @kernel(%arg0: i32, %arg1: i32, %arg2: memref<32x128xbf16, #tpu.memory_space<vmem>>, %arg3: memref<16x32xbf16, #tpu.memory_space<vmem>>, %arg4: memref<16x1xf32, #tpu.memory_space<vmem>>, %arg5: memref<16x1xf32, #tpu.memory_space<vmem>>, %arg6: memref<8x16xf32, #tpu.memory_space<vmem>>, %arg7: memref<8x1xf32, #tpu.memory_space<vmem>>, %arg8: memref<8x128xf32, #tpu.memory_space<vmem>>, %arg9: memref<16x1xf32, #tpu.memory_space<vmem>>, %arg10: memref<16x1xf32, #tpu.memory_space<vmem>>) attributes {dimension_semantics = [#tpu.dimension_semantics<arbitrary>, #tpu.dimension_semantics<arbitrary>], iteration_bounds = array<i64: 2, 2>, scalar_prefetch = 0 : i64, scratch_operands = 2 : i64, tpu.core_type = #tpu.core_type<tc>, window_params = [{transform_indices = @transform_0, window_bounds = array<i64: 32, 128>}, {pipeline_mode = #tpu.pipeline_mode<synchronous>, transform_indices = @transform_1, window_bounds = array<i64: 16, 32>}, {pipeline_mode = #tpu.pipeline_mode<synchronous>, transform_indices = @transform_2, window_bounds = array<i64: 16, 1>}, {pipeline_mode = #tpu.pipeline_mode<synchronous>, transform_indices = @transform_3, window_bounds = array<i64: 16, 1>}, {pipeline_mode = #tpu.pipeline_mode<synchronous>, transform_indices = @transform_4, window_bounds = array<i64: 8, 16>}, {pipeline_mode = #tpu.pipeline_mode<synchronous>, transform_indices = @transform_5, window_bounds = array<i64: 8, 1>}, {transform_indices = @transform_6, window_bounds = array<i64: 8, 128>}]} {
    %c0 = arith.constant 0 : index
    %c0_0 = arith.constant 0 : index
    %0 = vector.load %arg3[%c0, %c0_0] : memref<16x32xbf16, #tpu.memory_space<vmem>>, vector<16x32xbf16>
    %c0_1 = arith.constant 0 : index
    %c0_2 = arith.constant 0 : index
    %1 = vector.load %arg2[%c0_1, %c0_2] : memref<32x128xbf16, #tpu.memory_space<vmem>>, vector<32x128xbf16>
    %cst = arith.constant dense<0.000000e+00> : vector<16x128xf32>
    %2 = tpu.matmul %0, %1, %cst {dimension_numbers = #tpu.dot_dimension_numbers<[1], [0], [0], [1], [0, 0, 1, 1], [], []>} : vector<16x32xbf16>, vector<32x128xbf16>, vector<16x128xf32> -> vector<16x128xf32>
    %c0_i32 = arith.constant 0 : i32
    %3 = arith.cmpi eq, %arg0, %c0_i32 : i32
    %c0_i32_3 = arith.constant 0 : i32
    %4 = arith.cmpi eq, %arg1, %c0_i32_3 : i32
    %5 = arith.andi %3, %4 : i1
    %6 = arith.extui %5 : i1 to i32
    %c0_i32_4 = arith.constant 0 : i32
    %7 = arith.cmpi ne, %6, %c0_i32_4 : i32
    scf.if %7 {
      %cst_8 = arith.constant 0.000000e+00 : f32
      %14 = vector.broadcast %cst_8 : f32 to vector<16x1xf32>
      %c0_9 = arith.constant 0 : index
      %c0_10 = arith.constant 0 : index
      %15 = vector.load %arg9[%c0_9, %c0_10] : memref<16x1xf32, #tpu.memory_space<vmem>>, vector<16x1xf32>
      tpu.vector_store %arg9[%c0_9, %c0_10], %14 {strides = array<i32>} : memref<16x1xf32, #tpu.memory_space<vmem>>, vector<16x1xf32>,
      %cst_11 = arith.constant 0.000000e+00 : f32
      %16 = vector.broadcast %cst_11 : f32 to vector<16x1xf32>
      %c0_12 = arith.constant 0 : index
      %c0_13 = arith.constant 0 : index
      %17 = vector.load %arg10[%c0_12, %c0_13] : memref<16x1xf32, #tpu.memory_space<vmem>>, vector<16x1xf32>
      tpu.vector_store %arg10[%c0_12, %c0_13], %16 {strides = array<i32>} : memref<16x1xf32, #tpu.memory_space<vmem>>, vector<16x1xf32>,
    } else {
    }
    %c0_i32_5 = arith.constant 0 : i32
    %8 = arith.cmpi eq, %arg0, %c0_i32_5 : i32
    %9 = arith.extui %8 : i1 to i32
    %c0_i32_6 = arith.constant 0 : i32
    %10 = arith.cmpi ne, %9, %c0_i32_6 : i32
    scf.if %10 {
      %c0_8 = arith.constant 0 : index
      %c0_9 = arith.constant 0 : index
      %14 = vector.load %arg9[%c0_8, %c0_9] : memref<16x1xf32, #tpu.memory_space<vmem>>, vector<16x1xf32>
      %cst_10 = arith.constant dense<0.000000e+00> : vector<16xf32>
      %15 = vector.multi_reduction <add>, %2, %cst_10 [1] : vector<16x128xf32> to vector<16xf32>
      %16 = vector.shape_cast %15 : vector<16xf32> to vector<16x1xf32>
      %17 = arith.addf %14, %16 : vector<16x1xf32>
      %c0_11 = arith.constant 0 : index
      %c0_12 = arith.constant 0 : index
      %18 = vector.load %arg9[%c0_11, %c0_12] : memref<16x1xf32, #tpu.memory_space<vmem>>, vector<16x1xf32>
      tpu.vector_store %arg9[%c0_11, %c0_12], %17 {strides = array<i32>} : memref<16x1xf32, #tpu.memory_space<vmem>>, vector<16x1xf32>,
      %c0_13 = arith.constant 0 : index
      %c0_14 = arith.constant 0 : index
      %19 = vector.load %arg10[%c0_13, %c0_14] : memref<16x1xf32, #tpu.memory_space<vmem>>, vector<16x1xf32>
      %20 = arith.mulf %2, %2 : vector<16x128xf32>
      %cst_15 = arith.constant dense<0.000000e+00> : vector<16xf32>
      %21 = vector.multi_reduction <add>, %20, %cst_15 [1] : vector<16x128xf32> to vector<16xf32>
      %22 = vector.shape_cast %21 : vector<16xf32> to vector<16x1xf32>
      %23 = arith.addf %19, %22 : vector<16x1xf32>
      %c0_16 = arith.constant 0 : index
      %c0_17 = arith.constant 0 : index
      %24 = vector.load %arg10[%c0_16, %c0_17] : memref<16x1xf32, #tpu.memory_space<vmem>>, vector<16x1xf32>
      tpu.vector_store %arg10[%c0_16, %c0_17], %23 {strides = array<i32>} : memref<16x1xf32, #tpu.memory_space<vmem>>, vector<16x1xf32>,
    } else {
    }
    %c1_i32 = arith.constant 1 : i32
    %11 = arith.cmpi eq, %arg0, %c1_i32 : i32
    %12 = arith.extui %11 : i1 to i32
    %c0_i32_7 = arith.constant 0 : i32
    %13 = arith.cmpi ne, %12, %c0_i32_7 : i32
    scf.if %13 {
      %c0_8 = arith.constant 0 : index
      %c0_9 = arith.constant 0 : index
      %14 = vector.load %arg9[%c0_8, %c0_9] : memref<16x1xf32, #tpu.memory_space<vmem>>, vector<16x1xf32>
      %cst_10 = arith.constant 0.0357142873 : f32
      %15 = vector.broadcast %cst_10 : f32 to vector<16x1xf32>
      %16 = arith.mulf %14, %15 : vector<16x1xf32>
      %c0_11 = arith.constant 0 : index
      %c0_12 = arith.constant 0 : index
      %17 = vector.load %arg10[%c0_11, %c0_12] : memref<16x1xf32, #tpu.memory_space<vmem>>, vector<16x1xf32>
      %cst_13 = arith.constant 0.0357142873 : f32
      %18 = vector.broadcast %cst_13 : f32 to vector<16x1xf32>
      %19 = arith.mulf %17, %18 : vector<16x1xf32>
      %20 = arith.mulf %16, %16 : vector<16x1xf32>
      %21 = arith.subf %19, %20 : vector<16x1xf32>
      %cst_14 = arith.constant 0.000000e+00 : f32
      %22 = vector.broadcast %cst_14 : f32 to vector<16x1xf32>
      %23 = arith.maximumf %21, %22 : vector<16x1xf32>
      %c0_15 = arith.constant 0 : index
      %c0_16 = arith.constant 0 : index
      %24 = vector.load %arg4[%c0_15, %c0_16] : memref<16x1xf32, #tpu.memory_space<vmem>>, vector<16x1xf32>
      %cst_17 = arith.constant 9.99999974E-6 : f32
      %25 = vector.broadcast %cst_17 : f32 to vector<16x1xf32>
      %26 = arith.addf %23, %25 : vector<16x1xf32>
      %27 = math.rsqrt %26 : vector<16x1xf32>
      %28 = arith.mulf %24, %27 : vector<16x1xf32>
      %c0_18 = arith.constant 0 : index
      %c0_19 = arith.constant 0 : index
      %29 = vector.load %arg5[%c0_18, %c0_19] : memref<16x1xf32, #tpu.memory_space<vmem>>, vector<16x1xf32>
      %30 = arith.mulf %16, %28 : vector<16x1xf32>
      %31 = arith.subf %29, %30 : vector<16x1xf32>
      %32 = vector.broadcast %28 : vector<16x1xf32> to vector<16x128xf32>
      %33 = arith.mulf %2, %32 : vector<16x128xf32>
      %34 = vector.broadcast %31 : vector<16x1xf32> to vector<16x128xf32>
      %35 = arith.addf %33, %34 : vector<16x128xf32>
      %cst_20 = arith.constant 0.000000e+00 : f32
      %36 = vector.broadcast %cst_20 : f32 to vector<16x128xf32>
      %37 = arith.maximumf %35, %36 : vector<16x128xf32>
      %c0_21 = arith.constant 0 : index
      %c0_22 = arith.constant 0 : index
      %38 = vector.load %arg6[%c0_21, %c0_22] : memref<8x16xf32, #tpu.memory_space<vmem>>, vector<8x16xf32>
      %cst_23 = arith.constant dense<0.000000e+00> : vector<8x128xf32>
      %39 = tpu.matmul %38, %37, %cst_23 {dimension_numbers = #tpu.dot_dimension_numbers<[1], [0], [0], [1], [0, 0, 1, 1], [], []>} : vector<8x16xf32>, vector<16x128xf32>, vector<8x128xf32> -> vector<8x128xf32>
      %c0_24 = arith.constant 0 : index
      %c0_25 = arith.constant 0 : index
      %40 = vector.load %arg7[%c0_24, %c0_25] : memref<8x1xf32, #tpu.memory_space<vmem>>, vector<8x1xf32>
      %41 = vector.broadcast %40 : vector<8x1xf32> to vector<8x128xf32>
      %42 = arith.addf %39, %41 : vector<8x128xf32>
      %c0_26 = arith.constant 0 : index
      %c0_27 = arith.constant 0 : index
      %43 = vector.load %arg8[%c0_26, %c0_27] : memref<8x128xf32, #tpu.memory_space<vmem>>, vector<8x128xf32>
      tpu.vector_store %arg8[%c0_26, %c0_27], %42 {strides = array<i32>} : memref<8x128xf32, #tpu.memory_space<vmem>>, vector<8x128xf32>,
    } else {
    }
    return
  }
  func.func @transform_0(%arg0: i32, %arg1: i32) -> (i32, i32) {
    %c0_i32 = arith.constant 0 : i32
    %c0_i32_0 = arith.constant 0 : i32
    return %c0_i32, %arg1 : i32, i32
  }
  func.func @transform_1(%arg0: i32, %arg1: i32) -> (i32, i32) {
    %c0_i32 = arith.constant 0 : i32
    %c0_i32_0 = arith.constant 0 : i32
    %c0_i32_1 = arith.constant 0 : i32
    return %c0_i32, %c0_i32_0 : i32, i32
  }
  func.func @transform_2(%arg0: i32, %arg1: i32) -> (i32, i32) {
    %c0_i32 = arith.constant 0 : i32
    %c0_i32_0 = arith.constant 0 : i32
    %c0_i32_1 = arith.constant 0 : i32
    return %c0_i32, %c0_i32_0 : i32, i32
  }
  func.func @transform_3(%arg0: i32, %arg1: i32) -> (i32, i32) {
    %c0_i32 = arith.constant 0 : i32
    %c0_i32_0 = arith.constant 0 : i32
    %c0_i32_1 = arith.constant 0 : i32
    return %c0_i32, %c0_i32_0 : i32, i32
  }
  func.func @transform_4(%arg0: i32, %arg1: i32) -> (i32, i32) {
    %c0_i32 = arith.constant 0 : i32
    %c0_i32_0 = arith.constant 0 : i32
    %c0_i32_1 = arith.constant 0 : i32
    return %c0_i32, %c0_i32_0 : i32, i32
  }
  func.func @transform_5(%arg0: i32, %arg1: i32) -> (i32, i32) {
    %c0_i32 = arith.constant 0 : i32
    %c0_i32_0 = arith.constant 0 : i32
    %c0_i32_1 = arith.constant 0 : i32
    return %c0_i32, %c0_i32_0 : i32, i32
  }
  func.func @transform_6(%arg0: i32, %arg1: i32) -> (i32, i32) {
    %0 = arith.muli %arg0, %arg1 : i32
    %c0_i32 = arith.constant 0 : i32
    %c0_i32_0 = arith.constant 0 : i32
    return %c0_i32, %0 : i32, i32
  }
}

</mosaic_0001>

<bundles_post_ra>
// kernel: tpu_custom_call.1
= control target key start
LH: loop header
LB: loop body
LE: loop exit
PB: predicated region body
PF: predicated region fallthrough
CT: control target
= control target key end

     0   :  { %s1175_s0 = inlined_call_operand.vmem [shape: bf16[32,256], index: 0, kind: input, shape index: {}]   ;;  %s1176_s1 = inlined_call_operand.vmem [shape: bf16[16,32], index: 1, kind: input, shape index: {}]   ;;  %s1177_s2 = inlined_call_operand.vmem [shape: f32[16,1], index: 2, kind: input, shape index: {}]   ;;  %s1178_s3 = inlined_call_operand.vmem [shape: f32[16,1], index: 3, kind: input, shape index: {}]   ;;  %s1179_s4 = inlined_call_operand.hbm [shape: f32[8,16], index: 4, kind: input, shape index: {}]   ;;  %s1180_s5 = inlined_call_operand.vmem [shape: f32[8,1], index: 5, kind: input, shape index: {}]   ;;  %s1181_s6 = inlined_call_operand.hbm [shape: f32[8,256], index: 6, kind: output, shape index: {}]  }
   0x1   :  { %1185 = sst [smem:[#allocation14_spill]] %s1179_s4 }
   0x2   :  { %11 = vsyncpa [#allocation6], 0 }
   0x3   :  { %12 = vsyncpa [#allocation7], 0 }
   0x4   :  { %14 = vsyncpa [#allocation7 + $0x1], 0  ;;  %s952_s21 = smov 0   ;;  %s954_s22 = smov 0  }
   0x5   :  { %s956_s23 = smov 0   ;;  %s958_s24 = smov 0  }
   0x6   :  { %s960_s25 = smov 0   ;;  %s962_s26 = smov 0  }
   0x7   :  { %s964_s27 = smov 0   ;;  %s966_s28 = smov 0  }
   0x8   :  { %s968_s29 = smov 0   ;;  %s970_s30 = smov 0  }
   0x9 LB: > { %1186 = sst [smem:[#allocation11_spill]] %s908_s29  ;;  %s627_s7 = sadd.s32 4294967295, %s912_s30   ;;  %s912_s30 = sphi %s970_s30, %s20_s30   ;;  %s908_s29 = sphi %s968_s29, %s1197_s29   ;;  %s904_s28 = sphi %s966_s28, %s1204_s28   ;;  %s900_s27 = sphi %s964_s27, %s1195_s27   ;;  %s896_s26 = sphi %s962_s26, %s1203_s26   ;;  %s892_s25 = sphi %s960_s25, %s1202_s25   ;;  %s888_s24 = sphi %s958_s24, %s1201_s24   ;;  %s884_s23 = sphi %s956_s23, %s1200_s23   ;;  %s880_s22 = sphi %s954_s22, %s1199_s22   ;;  %s876_s21 = sphi %s952_s21, %s1198_s21  }
   0xa   : > { %s628_s8 = sadd.s32 4294967294, %s912_s30   ;;  %s29_s9 = sadd.s32 1, %s904_s28 }
   0xb   : > { %s32_s10 = sadd.s32 1, %s908_s29  ;;  %p30_p0 = scmp.ge.s32.totalorder %s29_s9, 2 }
   0xc   : > { %s39_s11 = sadd.s32 1, %s892_s25  ;;  %p46_p1 = scmp.ne.s32.totalorder %s892_s25, %s888_s24 }
   0xd   : > { %p47_p2 = scmp.eq.s32.totalorder %s912_s30, 0  ;;  %s1206_s9 = smov (%p30_p0, %s29_s9), 0 }
   0xe   : > { %1187 = sst [smem:[#allocation12_spill]] %s1206_s9  ;;  %s1208_s10 = smov (!%p30_p0, %s32_s10), %s908_s29 }
   0xf   : > { %s36_s12 = ssub.s32 %s904_s28, %s1206_s9  ;;  %p1015_p3 = por %p47_p2, %p46_p1 }
  0x10   : > { %p34_p4 = scmp.ge.s32.totalorder %s1208_s10, 2  ;;  %p37_p5 = scmp.eq.s32.totalorder %s36_s12, 0 }
  0x11   : > { %s167_s14 = smul.u32 %s904_s28, %s908_s29  ;;  %s172_s15 = sadd.s32 1, %s884_s23 }
  0x12   : > { %s1210_s10 = smov (%p34_p4, %s1208_s10), 0  ;;  %p182_p6 = scmp.ne.s32.totalorder %s884_s23, %s880_s22 }
  0x13   : > { %1189 = sst [smem:[#allocation13_spill]] %s1210_s10  ;;  %s168_s17 = smul.u32 %s1210_s10, %s1206_s9 }
  0x14   : > { %s1025_s16 = scalar_select %p37_p5, %s892_s25, %s39_s11  }
  0x15   : > { %p183_p7 = scmp.eq.s32.totalorder %s627_s7, 3  ;;  %p188_p8 = scmp.ne.s32.totalorder %s880_s22, %s876_s21 }
  0x16   : > { %s169_s18 = ssub.s32 %s167_s14, %s168_s17  ;;  %p189_p9 = scmp.eq.s32.totalorder %s628_s8, 3 }
  0x17   : > { %p170_p10 = scmp.eq.s32.totalorder %s169_s18, 0  ;;  %p1035_p11 = por %p183_p7, %p182_p6 }
  0x18   : > { %p1039_p12 = por %p189_p9, %p188_p8  ;;  %p629_p13 = scmp.ge.s32.totalorder %s912_s30, 1 }
  0x19   : > { %s1045_s12 = scalar_select %p170_p10, %s884_s23, %s172_s15  }
  0x1a   : > { %p196_p0 = scmp.lt.s32.totalorder %s912_s30, 5  ;;  %p1050_p1 = scmp.eq.s32.totalorder %s627_s7, 0 }
  0x1b   : > { %s1194_s4 = sld [smem:[#allocation14_spill]]  ;;  %s914_s15 = smov [#allocation5]  }
  0x1c   : > { %p1054_p2 = pnand %p629_p13, %p196_p0  ;;  %s219_s10 = sshll.u32 %s914_s15, 4  ;;  %s220_s10 = int_to_ptr.vmem [resolvable:$true] %s219_s10 }
  0x1d   : > { %p631_p6 = scmp.ge.s32.totalorder %s912_s30, 4 }
  0x1e   : > { %p667_p4 = pneg %p1054_p2 }
  0x1f   : > { %229 = sbr.rel (%p631_p6) target bundleno = 44 (0x2c), region = 36 }
  0x20   : > { %p668_p5 = pnand %p1050_p1, %p667_p4 }
  0x21   : > { %s217_s18 = sshll.u32 %s1194_s4, 4  ;;  %s218_s18 = int_to_ptr.hbm [resolvable:$true] %s217_s18 }
  0x22   : > { %670 = dma.hbm_to_vmem [thread:$0]  (!%p668_p5), %s218_s18, 128, %s220_s10, [#allocation6]  }
  0x24   : > { %232 = sbr.rel (!%p1015_p3) target bundleno = 44 (0x2c), region = 40  ;;  %s234_s7 = sand.u32 (%p1015_p3), 1, %s892_s25  }
  0x25   : > { %s633_s14 = sshll.u32 (%p1015_p3), %s904_s28, 2  ;;  %s632_s17 = sshll.u32 (%p1015_p3), %s234_s7, 4 }
  0x26   : > { %s238_s15 = scalar_lea.vmem (%p1015_p3), %s1175_s0, %s633_s14  ;;  %s236_s29 = scalar_lea.vmem (%p1015_p3), [#allocation4], %s632_s17 }
  0x27   : > { %v255_v0 = vld [vmem:[%s238_s15] sm:$0xf] (%p1015_p3)  ;;  %v257_v1 = vld [vmem:[%s238_s15 + $0x8] sm:$0xf] (%p1015_p3)  ;;  %v259_v2 = vld [vmem:[%s238_s15 + $0x10] sm:$0xf] (%p1015_p3) }
  0x28   : > { %256 = vst [vmem:[%s236_s29] sm:$0xf] (%p1015_p3), %v255_v0  ;;  %v261_v3 = vld [vmem:[%s238_s15 + $0x18] sm:$0xf] (%p1015_p3) }
  0x29   : > { %258 = vst [vmem:[%s236_s29 + $0x4] sm:$0xf] %v257_v1 }
  0x2a   : > { %260 = vst [vmem:[%s236_s29 + $0x8] sm:$0xf] %v259_v2 }
  0x2b   : > { %262 = vst [vmem:[%s236_s29 + $0xc] sm:$0xf] %v261_v3 }
  0x2c PF: > { %297 = sbr.rel (%p1054_p2) target bundleno = 649 (0x289), region = 81  ;;  %s300_s10 = sand.u32 (!%p1054_p2), 1, %s888_s24  }
  0x2d   : > { %s635_s13 = sshll.u32 (!%p1054_p2), %s300_s10, 4 }
  0x2e   : > { %s302_s4 = scalar_lea.vmem (!%p1054_p2), [#allocation4], %s635_s13 }
  0x31   : > { %867 = dma.done.wait (%p1050_p1), [#allocation6], 128  }
  0x32   : > { %869 = vsyncadd (%p1050_p1), [#allocation6], 4294967168  ;;  %s331_s29 = sand.u32 1, %s880_s22   ;;  %v660_v4 = vld [vmem:[%s302_s4 + $0x8] sm:$0xff]  ;;  %v659_v5 = vld [vmem:[%s302_s4] sm:$0xff]  ;;  %vm359_vm0 = vcmask 261120  }
  0x33   : > { %s1083_s9 = sshll.u32 %s331_s29, 3  ;;  %369 = vmatpush.bf16.msra.mxu0 %v660_v4  ;;  %v658_v6 = vld [vmem:[%s1176_s1] sm:$0xff]  ;;  %p377_p3 = scmp.eq.s32.totalorder %s900_s27, 0 }
  0x34   : > { %p378_p7 = scmp.eq.s32.totalorder %s896_s26, 0  ;;  %s333_s11 = scalar_lea.vmem [#allocation8], %s1083_s9 }
  0x36   : > { %p379_p8 = pnand %p378_p7, %p377_p3 }
  0x37   : > { %370 = vmatpush.bf16.msra.mxu0 %v659_v5 }
  0x3a   : > { %650 = vmatmul.msk.bf16.vlgmr.msra.gmra.mxu0 %vm359_vm0, %v658_v6 }
  0xb7   : > { %v1090_v7 = vpop.f32.mrf.mxu0 }
  0xbb   : > { %382 = sbr.rel (%p379_p8) target bundleno = 197 (0xc5), region = 93 }
  0xbf   : > { %v1092_v8 = vpop.f32.mrf.mxu0 }
  0xc0   : > { %vm383_vm1 = vcmask 7168   ;;  %v915_v9 = vmov 0.0  }
  0xc1   : > { %384 = vst.msk [vmem:[#allocation2] sm:$0xff] %vm383_vm1, %v915_v9 }
  0xc2   : > { %385 = vst.msk [vmem:[#allocation2 + $0x8] sm:$0xff] %vm383_vm1, %v915_v9 }
  0xc3   : > { %386 = vst.msk [vmem:[#allocation3] sm:$0xff] %vm383_vm1, %v915_v9 }
  0xc4   : > { %387 = vst.msk [vmem:[#allocation3 + $0x8] sm:$0xff] %vm383_vm1, %v915_v9 }
  0xc5 PF: > { %p651_p9 = scmp.ne.s32.totalorder %s900_s27, 0 }
  0xc7   : > { %390 = sbr.rel (%p651_p9) target bundleno = 333 (0x14d), region = 97 }
  0xcc   : > { %393 = vadd.xlane.f32.xlu0 %v1090_v7  ;;  %v404_v10 = vmul.f32 %v1090_v7, %v1090_v7  ;;  %v405_v11 = vmul.f32 %v1092_v8, %v1092_v8  ;;  %v391_v12 = vld [vmem:[#allocation2] sm:$0xff]  ;;  %vm399_vm2 = vcmask 7168   ;;  %v402_v14 = vld [vmem:[#allocation3] sm:$0xff]  ;;  %v392_v18 = vld [vmem:[#allocation2 + $0x8] sm:$0xff] }
  0xcd   : > { %v403_v20 = vld [vmem:[#allocation3 + $0x8] sm:$0xff] }
  0xce   : > { %406 = vadd.xlane.f32.xlu1 %v404_v10 }
  0xd4   : > { %395 = vadd.xlane.f32.xlu0 %v1092_v8 }
  0xd6   : > { %408 = vadd.xlane.f32.xlu1 %v405_v11 }
 0x13f   : > { %v394_v13 = vpop.xlane.xlu0 %393 }
 0x140   : > { %v397_v15 = vadd.f32 %v394_v13, %v391_v12 }
 0x141   : > { %v407_v16 = vpop.xlane.xlu1 %406 }
 0x142   : > { %400 = vst.msk [vmem:[#allocation2] sm:$0xff] %vm399_vm2, %v397_v15  ;;  %v410_v17 = vadd.f32 %v407_v16, %v402_v14 }
 0x144   : > { %412 = vst.msk [vmem:[#allocation3] sm:$0xff] %vm399_vm2, %v410_v17 }
 0x147   : > { %v396_v19 = vpop.xlane.xlu0 %395 }
 0x148   : > { %v398_v21 = vadd.f32 %v396_v19, %v392_v18 }
 0x149   : > { %v409_v22 = vpop.xlane.xlu1 %408 }
 0x14a   : > { %401 = vst.msk [vmem:[#allocation2 + $0x8] sm:$0xff] %vm399_vm2, %v398_v21  ;;  %v411_v23 = vadd.f32 %v409_v22, %v403_v20 }
 0x14c   : > { %413 = vst.msk [vmem:[#allocation3 + $0x8] sm:$0xff] %vm399_vm2, %v411_v23 }
 0x14d PF: > { %p652_p10 = scmp.ne.s32.totalorder %s900_s27, 1 }
 0x14f   : > { %417 = sbr.rel (%p652_p10) target bundleno = 632 (0x278), region = 101 }
 0x154   : > { %v419_v24 = vld [vmem:[#allocation2 + $0x8] sm:$0xff]  ;;  %v423_v25 = vld [vmem:[#allocation3 + $0x8] sm:$0xff]  ;;  %v916_v26 = vmov 0   ;;  %v418_v29 = vld [vmem:[#allocation2] sm:$0xff]  ;;  %vm497_vm9 = vcmask 130048  }
 0x155   : > { %761 = vset.pattern.permute.xlu0 %v916_v26  ;;  %v421_v27 = vmul.f32 0.035714287, %v419_v24  ;;  %v425_v28 = vmul.f32 0.035714287, %v423_v25  ;;  %762 = vset.pattern.permute.xlu1 %v916_v26  ;;  %v420_v30 = vmul.f32 0.035714287, %v418_v29 }
 0x156   : > { %v422_v31 = vld [vmem:[#allocation3] sm:$0xff]  ;;  %763 = vset.pattern.permute.xlu2 %v916_v26  ;;  %v433_v51 = vld [vmem:[%s1177_s2 + $0x8] sm:$0xff]  ;;  %v432_v55 = vld [vmem:[%s1177_s2] sm:$0xff] }
 0x157   : > { %v427_v32 = vmul.f32 %v421_v27, %v421_v27  ;;  %v424_v33 = vmul.f32 0.035714287, %v422_v31  ;;  %v426_v34 = vmul.f32 %v420_v30, %v420_v30  ;;  %v459_v58 = vld [vmem:[%s1178_s3 + $0x8] sm:$0xff]  ;;  %v458_v63 = vld [vmem:[%s1178_s3] sm:$0xff] }
 0x158   : > { %v491_v1 = vld [vmem:[%s1180_s5] sm:$0xff] }
 0x159   : > { %v429_v35 = vsub.f32 %v425_v28, %v427_v32  ;;  %v428_v36 = vsub.f32 %v424_v33, %v426_v34  ;;  %494 = vperm.xlu2 %763, %v491_v1   ;;  %v490_v14 = vld [vmem:[#allocation5] sm:$0xff] }
 0x15b   : > { %v431_v37 = vmax.f32 %v429_v35, 0.0  ;;  %v430_v38 = vmax.f32 %v428_v36, 0.0 }
 0x15d   : > { %v435_v39 = vadd.f32 1e-05, %v431_v37  ;;  %v434_v40 = vadd.f32 1e-05, %v430_v38 }
 0x15f   : > { %764 = vrsqrt.f32 %v435_v39  ;;  %vm452_vm3 = vweird.f32 %v435_v39  ;;  %vm442_vm5 = vweird.f32 %v434_v40 }
 0x160   : > { %766 = vrsqrt.f32 %v434_v40 }
 0x165   : > { %v765_v41 = vpop.eup %764 }
 0x166   : > { %v767_v42 = vpop.eup %766  ;;  %v447_v43 = vmul.f32 %v765_v41, %v435_v39  ;;  %vm453_vm4 = vweird.f32 %v765_v41 }
 0x167   : > { %v437_v44 = vmul.f32 %v767_v42, %v434_v40  ;;  %vm443_vm6 = vweird.f32 %v767_v42  ;;  %vm454_vm7 = vmor %vm452_vm3, %vm453_vm4 }
 0x168   : > { %v448_v45 = vmul.f32 %v765_v41, %v447_v43  ;;  %vm444_vm8 = vmor %vm442_vm5, %vm443_vm6 }
 0x169   : > { %v438_v46 = vmul.f32 %v767_v42, %v437_v44 }
 0x16a   : > { %v449_v47 = vmul.f32 0.5, %v448_v45 }
 0x16b   : > { %v439_v48 = vmul.f32 0.5, %v438_v46 }
 0x16c   : > { %v450_v49 = vsub.f32 1.5, %v449_v47 }
 0x16d   : > { %v440_v50 = vsub.f32 1.5, %v439_v48 }
 0x16e   : > { %v451_v52 = vmul.f32 %v765_v41, %v450_v49 }
 0x16f   : > { %v441_v53 = vmul.f32 %v767_v42, %v440_v50 }
 0x170   : > { %v455_v54 = vsel %vm454_vm7, %v765_v41, %v451_v52 }
 0x171   : > { %v457_v56 = vmul.f32 %v455_v54, %v433_v51  ;;  %v445_v57 = vsel %vm444_vm8, %v767_v42, %v441_v53 }
 0x172   : > { %v456_v60 = vmul.f32 %v445_v57, %v432_v55 }
 0x173   : > { %471 = vperm.xlu0 %761, %v457_v56   ;;  %v461_v59 = vmul.f32 %v457_v56, %v421_v27 }
 0x174   : > { %v460_v62 = vmul.f32 %v456_v60, %v420_v30 }
 0x175   : > { %v463_v61 = vsub.f32 %v459_v58, %v461_v59 }
 0x176   : > { %v462_v0 = vsub.f32 %v458_v63, %v460_v62 }
 0x177   : > { %483 = vperm.xlu1 %762, %v463_v61  }
 0x17b   : > { %466 = vperm.xlu0 %761, %v456_v60  }
 0x17f   : > { %478 = vperm.xlu1 %762, %v462_v0  }
 0x1b3   : > { %v495_v15 = vpop.permute.xlu2 %494 }
 0x1e5   : > { %v472_v2 = vpop.permute.xlu0 %471 }
 0x1e6   : > { %v475_v3 = vmul.f32 %v472_v2, %v1092_v8 }
 0x1e9   : > { %v484_v4 = vpop.permute.xlu1 %483 }
 0x1ea   : > { %v487_v5 = vadd.f32 %v484_v4, %v475_v3 }
 0x1ec   : > { %v489_v6 = vmax.f32 %v487_v5, 0.0 }
 0x1ed   : > { %v467_v9 = vpop.permute.xlu0 %466 }
 0x1ee   : > { %515 = vmatpush.msra.mxu0 %v489_v6  ;;  %v474_v10 = vmul.f32 %v467_v9, %v1090_v7 }
 0x1f1   : > { %v479_v11 = vpop.permute.xlu1 %478 }
 0x1f2   : > { %v486_v12 = vadd.f32 %v479_v11, %v474_v10 }
 0x1f4   : > { %v488_v13 = vmax.f32 %v486_v12, 0.0 }
 0x1f6   : > { %516 = vmatpush.msra.mxu0 %v488_v13 }
 0x1f7   : > { %653 = vmatmul.msk.f32.vlgmr.msra.gmra.mxu0 %vm497_vm9, %v490_v14 }
 0x274   : > { %v518_v16 = vpop.f32.mrf.mxu0 }
 0x275   : > { %v519_v17 = vadd.f32 %v518_v16, %v495_v15 }
 0x277   : > { %521 = vst [vmem:[%s333_s11] sm:$0xff] %v519_v17 }
 0x278 PF: > { %s530_s18 = smul.u32 %s896_s26, %s900_s27  ;;  %s536_s7 = sshll.u32 %s333_s11, 4  ;;  %s537_s7 = int_to_ptr.vmem [resolvable:$true] %s536_s7 }
 0x279   : > { %s523_s4 = scalar_lea.sflag [#allocation7], %s331_s29  ;;  %s818_s9 = scalar_lea.hbm %s1181_s6, 16 }
 0x27a   : > { %s655_s14 = sshll.u32 %s530_s18, 3 }
 0x27b   : > { %s534_s10 = scalar_lea.hbm %s1181_s6, %s655_s14 }
 0x27c   : > { %s538_s13 = sshll.u32 %s534_s10, 4  ;;  %s539_s13 = int_to_ptr.hbm [resolvable:$true] %s538_s13 }
 0x27d   : > { %s812_s24 = sshra.s32 %s539_s13, 4  ;;  %s813_s24 = int_to_ptr.hbm [resolvable:$true] %s812_s24 }
 0x27e   : > { %s814_s8 = scalar_lea.hbm %s813_s24, 8  ;;  %p819_p2 = scmp.lt.s32.totalorder %s813_s24, %s1181_s6 }
 0x27f   : > { %p815_p13 = scmp.ne.s32.totalorder %s813_s24, %s814_s8  ;;  %p820_p4 = scmp.lt.s32.totalorder %s818_s9, %s814_s8 }
 0x281   : > { %p816_p0 = pnand %p815_p13, %p1035_p11  ;;  %p821_p5 = por %p820_p4, %p819_p2 }
 0x283   : > { %p817_p1 = pneg %p816_p0 }
 0x285   : > { %p822_p6 = pnand %p821_p5, %p817_p1 }
 0x287   : > { %825 = shalt.err (!%p822_p6)
}
 0x288   : > { %665 = dma.vmem_to_hbm [thread:$0]  (%p1035_p11), %s537_s7, 128, %s539_s13, %s523_s4  }
 0x289 PF: > { %p677_p3 = scmp.ge.s32.totalorder %s912_s30, 2  ;;  %s550_s29 = sand.u32 1, %s876_s21  }
 0x28a   : > { %s551_s14 = scalar_lea.sflag [#allocation7], %s550_s29 }
 0x28b   : > { %p672_p7 = pnand %p677_p3, %p1039_p12 }
 0x28d   : > { %p673_p8 = pneg %p672_p7 }
 0x28f   : > { %871 = dma.done.wait (%p673_p8), %s551_s14, 128  }
 0x290   : > { %873 = vsyncadd (%p673_p8), %s551_s14, 4294967168  ;;  %s20_s30 = sadd.s32 1, %s912_s30   ;;  %s1195_s27 = sld [smem:[#allocation11_spill]] }
 0x291   : > { %p17_p9 = scmp.ge.s32.totalorder %s20_s30, 6   ;;  %s1196_s19 = sld [smem:[#allocation12_spill]] }
 0x292   : > { %s1197_s29 = sld [smem:[#allocation13_spill]]  ;;  %s1198_s21 = smov %s880_s22 }
 0x293   : > { %s1199_s22 = smov %s884_s23  ;;  %s1200_s23 = smov %s1045_s12 }
 0x294   : > { %s1201_s24 = smov %s892_s25  ;;  %s1202_s25 = smov %s1025_s16 }
 0x295   : > { %s1203_s26 = smov %s904_s28  ;;  %19 = sbr.rel (!%p17_p9) target bundleno = 9 (0x9), region = 142 }
 0x297   : > { %s1204_s28 = smov %s1196_s19 }
 0x29a   :  { %557 = vsyncpa [#allocation6], 1 }
 0x29b   :  { %559 = vsyncpa [#allocation6 + $0x1], 1 }
 0x29c   :  { %560 = vsyncpa [#allocation7], 1 }
 0x29d   :  { %562 = vsyncpa [#allocation7 + $0x1], 1 }

</bundles_post_ra>
